<compile_context>
chip_gen: v6e
topology: v6e:2x2x1
jax: 0.10.0
libtpu: 0.0.40
codegen_flags: <defaults>
</compile_context>

<pallas_src>
import functools

import jax
import jax.numpy as jnp
from jax import lax
from jax.experimental import pallas as pl
from jax.experimental.pallas import tpu as pltpu

LANE = 128
MAX_TILE_ROWS = 1024  # 1024x128 f32 tile = 512 KiB


def _dice_bce_kernel(x_ref, t_ref, out_ref,
                     acc_inter, acc_denom, acc_bce,
                     *, n_elems, smooth, tile_rows, fold_rows, needs_mask):
    step = pl.program_id(0)

    # Init accumulators on the first grid step (reduction axis => "arbitrary").
    @pl.when(step == 0)
    def _():
        acc_inter[...] = jnp.zeros_like(acc_inter)
        acc_denom[...] = jnp.zeros_like(acc_denom)
        acc_bce[...] = jnp.zeros_like(acc_bce)

    x = x_ref[...].astype(jnp.float32)
    t = t_ref[...].astype(jnp.float32)

    if needs_mask:
        # Sanitize out-of-range elements (LANE padding or partial last block)
        # so they contribute exactly 0 to every partial sum.
        row = lax.broadcasted_iota(jnp.int32, (tile_rows, LANE), 0)
        lane = lax.broadcasted_iota(jnp.int32, (tile_rows, LANE), 1)
        gidx = (step * tile_rows + row) * LANE + lane
        valid = gidx < n_elems
        x = jnp.where(valid, x, -1e4)   # sigmoid -> 0, bce -> 0
        t = jnp.where(valid, t, 0.0)

    # One transcendental shared between sigmoid and the stable BCE term:
    #   bce = max(x, 0) - x*t + log1p(exp(-|x|))
    #   sigmoid(x) = where(x >= 0, 1, e) / (1 + e),  e = exp(-|x|)
    e = jnp.exp(-jnp.abs(x))
    bce = jnp.maximum(x, 0.0) - x * t + jnp.log1p(e)
    sig = jnp.where(x >= 0.0, 1.0, e) / (1.0 + e)

    def fold(v):
        # VPU-only partial reduce: (tile_rows, LANE) -> (fold_rows, LANE).
        return jnp.sum(v.reshape(-1, fold_rows, LANE), axis=0)

    acc_inter[...] += fold(sig * t)
    acc_denom[...] += fold(sig + t)
    acc_bce[...] += fold(bce)

    # Finalize on the last grid step: single cross-lane reduction + scalar math.
    @pl.when(step == pl.num_programs(0) - 1)
    def _():
        inter = jnp.sum(acc_inter[...])
        denom = jnp.sum(acc_denom[...])
        bce_mean = jnp.sum(acc_bce[...]) * (1.0 / n_elems)
        dice = 1.0 - (2.0 * inter + smooth) / (denom + smooth)
        out_ref[...] = jnp.reshape(bce_mean + dice, (1, 1))


def dice_bce_loss(inputs, targets, smooth=1e-6):
    """inputs: logits, targets: same shape (any rank/dtype). Returns f32 scalar."""
    n = inputs.size
    x = inputs.reshape(-1)          # native dtype; kernel casts to f32
    t = targets.reshape(-1)

    lane_pad = (-n) % LANE
    if lane_pad:
        # Only needed when total element count isn't a multiple of 128; the
        # pad values are masked out inside the kernel.
        x = jnp.pad(x, (0, lane_pad))
        t = jnp.pad(t, (0, lane_pad))
    rows = (n + lane_pad) // LANE

    tile_rows = rows if rows <= MAX_TILE_ROWS else MAX_TILE_ROWS
    grid = pl.cdiv(rows, tile_rows)
    fold_rows = 8 if tile_rows % 8 == 0 else 1
    needs_mask = (grid * tile_rows * LANE) != n

    x2 = x.reshape(rows, LANE)
    t2 = t.reshape(rows, LANE)

    kernel = functools.partial(
        _dice_bce_kernel,
        n_elems=int(n), smooth=float(smooth),
        tile_rows=tile_rows, fold_rows=fold_rows, needs_mask=needs_mask)

    out = pl.pallas_call(
        kernel,
        out_shape=jax.ShapeDtypeStruct((1, 1), jnp.float32),
        grid_spec=pltpu.PrefetchScalarGridSpec(
            num_scalar_prefetch=0,
            grid=(grid,),
            in_specs=[
                pl.BlockSpec((tile_rows, LANE), lambda i: (i, 0)),
                pl.BlockSpec((tile_rows, LANE), lambda i: (i, 0)),
            ],
            out_specs=pl.BlockSpec((1, 1), lambda i: (0, 0)),
            scratch_shapes=[pltpu.VMEM((fold_rows, LANE), jnp.float32)] * 3,
        ),
        compiler_params=pltpu.CompilerParams(
            dimension_semantics=("arbitrary",)),
    )(x2, t2)
    # TODO(synk): on v7x a leading "parallel" grid axis could shard the
    # reduction across both TensorCores; kept single-axis for simplicity.
    return out[0, 0]


def _reference(inputs, targets, smooth=1e-6):
    x = inputs.astype(jnp.float32)
    t = targets.astype(jnp.float32)
    sig = jax.nn.sigmoid(x)
    inter = jnp.sum(sig * t)
    dice = 1.0 - (2.0 * inter + smooth) / (jnp.sum(sig) + jnp.sum(t) + smooth)
    bce = jnp.mean(jnp.maximum(x, 0.0) - x * t + jnp.log1p(jnp.exp(-jnp.abs(x))))
    return bce + dice


if __name__ == "__main__":
    key = jax.random.PRNGKey(0)
    k1, k2, k3, k4 = jax.random.split(key, 4)

    # Primary case: small segmentation-style NCHW logits + binary mask targets.
    inputs = jax.random.normal(k1, (2, 4, 16, 16), dtype=jnp.float32) * 2.0
    targets = (jax.random.uniform(k2, (2, 4, 16, 16)) > 0.5).astype(jnp.float32)
    loss = jax.block_until_ready(dice_bce_loss(inputs, targets))
    ref = jax.block_until_ready(_reference(inputs, targets))
    assert jnp.allclose(loss, ref, rtol=1e-5, atol=1e-5), (loss, ref)

    # Second case: exercises multi-step grid + partial last block + masking.
    inputs2 = jax.random.normal(k3, (2, 3, 160, 160), dtype=jnp.float32)
    targets2 = (jax.random.uniform(k4, (2, 3, 160, 160)) > 0.5).astype(jnp.float32)
    loss2 = jax.block_until_ready(dice_bce_loss(inputs2, targets2))
    ref2 = jax.block_until_ready(_reference(inputs2, targets2))
    assert jnp.allclose(loss2, ref2, rtol=1e-5, atol=1e-5), (loss2, ref2)

    print("KERNEL_OK")
</pallas_src>

<mosaic_0001>
module attributes {stable_mosaic.version = 11 : i64} {
  func.func @_dice_bce_kernel(%arg0: i32, %arg1: memref<16x128xf32, #tpu.memory_space<vmem>>, %arg2: memref<16x128xf32, #tpu.memory_space<vmem>>, %arg3: memref<1x1xf32, #tpu.memory_space<vmem>>, %arg4: memref<8x128xf32, #tpu.memory_space<vmem>>, %arg5: memref<8x128xf32, #tpu.memory_space<vmem>>, %arg6: memref<8x128xf32, #tpu.memory_space<vmem>>) attributes {dimension_semantics = [#tpu.dimension_semantics<arbitrary>], iteration_bounds = array<i64: 1>, scalar_prefetch = 0 : i64, scratch_operands = 3 : i64, tpu.core_type = #tpu.core_type<tc>, window_params = [{transform_indices = @transform_0, window_bounds = array<i64: 16, 128>}, {transform_indices = @transform_1, window_bounds = array<i64: 16, 128>}, {pipeline_mode = #tpu.pipeline_mode<synchronous>, transform_indices = @transform_2, window_bounds = array<i64: 1, 1>}]} {
    %c0_i32 = arith.constant 0 : i32
    %0 = arith.cmpi eq, %arg0, %c0_i32 : i32
    %1 = arith.extui %0 : i1 to i32
    %c0_i32_0 = arith.constant 0 : i32
    %2 = arith.cmpi ne, %1, %c0_i32_0 : i32
    scf.if %2 {
      %cst_25 = arith.constant 0.000000e+00 : f32
      %42 = vector.broadcast %cst_25 : f32 to vector<8x128xf32>
      %c0_26 = arith.constant 0 : index
      %c0_27 = arith.constant 0 : index
      %43 = vector.load %arg4[%c0_26, %c0_27] : memref<8x128xf32, #tpu.memory_space<vmem>>, vector<8x128xf32>
      tpu.vector_store %arg4[%c0_26, %c0_27], %42 {strides = array<i32>} : memref<8x128xf32, #tpu.memory_space<vmem>>, vector<8x128xf32>,
      %cst_28 = arith.constant 0.000000e+00 : f32
      %44 = vector.broadcast %cst_28 : f32 to vector<8x128xf32>
      %c0_29 = arith.constant 0 : index
      %c0_30 = arith.constant 0 : index
      %45 = vector.load %arg5[%c0_29, %c0_30] : memref<8x128xf32, #tpu.memory_space<vmem>>, vector<8x128xf32>
      tpu.vector_store %arg5[%c0_29, %c0_30], %44 {strides = array<i32>} : memref<8x128xf32, #tpu.memory_space<vmem>>, vector<8x128xf32>,
      %cst_31 = arith.constant 0.000000e+00 : f32
      %46 = vector.broadcast %cst_31 : f32 to vector<8x128xf32>
      %c0_32 = arith.constant 0 : index
      %c0_33 = arith.constant 0 : index
      %47 = vector.load %arg6[%c0_32, %c0_33] : memref<8x128xf32, #tpu.memory_space<vmem>>, vector<8x128xf32>
      tpu.vector_store %arg6[%c0_32, %c0_33], %46 {strides = array<i32>} : memref<8x128xf32, #tpu.memory_space<vmem>>, vector<8x128xf32>,
    } else {
    }
    %c0 = arith.constant 0 : index
    %c0_1 = arith.constant 0 : index
    %3 = vector.load %arg1[%c0, %c0_1] : memref<16x128xf32, #tpu.memory_space<vmem>>, vector<16x128xf32>
    %c0_2 = arith.constant 0 : index
    %c0_3 = arith.constant 0 : index
    %4 = vector.load %arg2[%c0_2, %c0_3] : memref<16x128xf32, #tpu.memory_space<vmem>>, vector<16x128xf32>
    %5 = math.absf %3 : vector<16x128xf32>
    %cst = arith.constant 0.000000e+00 : f32
    %6 = vector.broadcast %cst : f32 to vector<16x128xf32>
    %7 = arith.subf %6, %5 : vector<16x128xf32>
    %8 = math.exp %7 : vector<16x128xf32>
    %cst_4 = arith.constant 0.000000e+00 : f32
    %9 = vector.broadcast %cst_4 : f32 to vector<16x128xf32>
    %10 = arith.maximumf %3, %9 : vector<16x128xf32>
    %11 = arith.mulf %3, %4 : vector<16x128xf32>
    %12 = arith.subf %10, %11 : vector<16x128xf32>
    %13 = math.log1p %8 : vector<16x128xf32>
    %14 = arith.addf %12, %13 : vector<16x128xf32>
    %cst_5 = arith.constant 0.000000e+00 : f32
    %15 = vector.broadcast %cst_5 : f32 to vector<16x128xf32>
    %16 = arith.cmpf oge, %3, %15 : vector<16x128xf32>
    %cst_6 = arith.constant 1.000000e+00 : f32
    %17 = vector.broadcast %cst_6 : f32 to vector<16x128xf32>
    %18 = arith.select %16, %17, %8 : vector<16x128xi1>, vector<16x128xf32>
    %cst_7 = arith.constant 1.000000e+00 : f32
    %19 = vector.broadcast %cst_7 : f32 to vector<16x128xf32>
    %20 = arith.addf %19, %8 : vector<16x128xf32>
    %21 = arith.divf %18, %20 : vector<16x128xf32>
    %c0_8 = arith.constant 0 : index
    %c0_9 = arith.constant 0 : index
    %22 = vector.load %arg4[%c0_8, %c0_9] : memref<8x128xf32, #tpu.memory_space<vmem>>, vector<8x128xf32>
    %23 = arith.mulf %21, %4 : vector<16x128xf32>
    %24 = vector.shape_cast %23 : vector<16x128xf32> to vector<2x8x128xf32>
    %cst_10 = arith.constant dense<0.000000e+00> : vector<8x128xf32>
    %25 = vector.multi_reduction <add>, %24, %cst_10 [0] : vector<2x8x128xf32> to vector<8x128xf32>
    %26 = arith.addf %22, %25 : vector<8x128xf32>
    %c0_11 = arith.constant 0 : index
    %c0_12 = arith.constant 0 : index
    %27 = vector.load %arg4[%c0_11, %c0_12] : memref<8x128xf32, #tpu.memory_space<vmem>>, vector<8x128xf32>
    tpu.vector_store %arg4[%c0_11, %c0_12], %26 {strides = array<i32>} : memref<8x128xf32, #tpu.memory_space<vmem>>, vector<8x128xf32>,
    %c0_13 = arith.constant 0 : index
    %c0_14 = arith.constant 0 : index
    %28 = vector.load %arg5[%c0_13, %c0_14] : memref<8x128xf32, #tpu.memory_space<vmem>>, vector<8x128xf32>
    %29 = arith.addf %21, %4 : vector<16x128xf32>
    %30 = vector.shape_cast %29 : vector<16x128xf32> to vector<2x8x128xf32>
    %cst_15 = arith.constant dense<0.000000e+00> : vector<8x128xf32>
    %31 = vector.multi_reduction <add>, %30, %cst_15 [0] : vector<2x8x128xf32> to vector<8x128xf32>
    %32 = arith.addf %28, %31 : vector<8x128xf32>
    %c0_16 = arith.constant 0 : index
    %c0_17 = arith.constant 0 : index
    %33 = vector.load %arg5[%c0_16, %c0_17] : memref<8x128xf32, #tpu.memory_space<vmem>>, vector<8x128xf32>
    tpu.vector_store %arg5[%c0_16, %c0_17], %32 {strides = array<i32>} : memref<8x128xf32, #tpu.memory_space<vmem>>, vector<8x128xf32>,
    %c0_18 = arith.constant 0 : index
    %c0_19 = arith.constant 0 : index
    %34 = vector.load %arg6[%c0_18, %c0_19] : memref<8x128xf32, #tpu.memory_space<vmem>>, vector<8x128xf32>
    %35 = vector.shape_cast %14 : vector<16x128xf32> to vector<2x8x128xf32>
    %cst_20 = arith.constant dense<0.000000e+00> : vector<8x128xf32>
    %36 = vector.multi_reduction <add>, %35, %cst_20 [0] : vector<2x8x128xf32> to vector<8x128xf32>
    %37 = arith.addf %34, %36 : vector<8x128xf32>
    %c0_21 = arith.constant 0 : index
    %c0_22 = arith.constant 0 : index
    %38 = vector.load %arg6[%c0_21, %c0_22] : memref<8x128xf32, #tpu.memory_space<vmem>>, vector<8x128xf32>
    tpu.vector_store %arg6[%c0_21, %c0_22], %37 {strides = array<i32>} : memref<8x128xf32, #tpu.memory_space<vmem>>, vector<8x128xf32>,
    %c0_i32_23 = arith.constant 0 : i32
    %39 = arith.cmpi eq, %arg0, %c0_i32_23 : i32
    %40 = arith.extui %39 : i1 to i32
    %c0_i32_24 = arith.constant 0 : i32
    %41 = arith.cmpi ne, %40, %c0_i32_24 : i32
    scf.if %41 {
      %c0_25 = arith.constant 0 : index
      %c0_26 = arith.constant 0 : index
      %42 = vector.load %arg4[%c0_25, %c0_26] : memref<8x128xf32, #tpu.memory_space<vmem>>, vector<8x128xf32>
      %43 = vector.shape_cast %42 : vector<8x128xf32> to vector<1x8x128xf32>
      %cst_27 = arith.constant dense<0.000000e+00> : vector<1xf32>
      %44 = vector.multi_reduction <add>, %43, %cst_27 [1, 2] : vector<1x8x128xf32> to vector<1xf32>
      %45 = vector.shape_cast %44 : vector<1xf32> to vector<1x1x1xf32>
      %46 = vector.extract %45[0, 0, 0] : f32 from vector<1x1x1xf32>
      %c0_28 = arith.constant 0 : index
      %c0_29 = arith.constant 0 : index
      %47 = vector.load %arg5[%c0_28, %c0_29] : memref<8x128xf32, #tpu.memory_space<vmem>>, vector<8x128xf32>
      %48 = vector.shape_cast %47 : vector<8x128xf32> to vector<1x8x128xf32>
      %cst_30 = arith.constant dense<0.000000e+00> : vector<1xf32>
      %49 = vector.multi_reduction <add>, %48, %cst_30 [1, 2] : vector<1x8x128xf32> to vector<1xf32>
      %50 = vector.shape_cast %49 : vector<1xf32> to vector<1x1x1xf32>
      %51 = vector.extract %50[0, 0, 0] : f32 from vector<1x1x1xf32>
      %c0_31 = arith.constant 0 : index
      %c0_32 = arith.constant 0 : index
      %52 = vector.load %arg6[%c0_31, %c0_32] : memref<8x128xf32, #tpu.memory_space<vmem>>, vector<8x128xf32>
      %53 = vector.shape_cast %52 : vector<8x128xf32> to vector<1x8x128xf32>
      %cst_33 = arith.constant dense<0.000000e+00> : vector<1xf32>
      %54 = vector.multi_reduction <add>, %53, %cst_33 [1, 2] : vector<1x8x128xf32> to vector<1xf32>
      %55 = vector.shape_cast %54 : vector<1xf32> to vector<1x1x1xf32>
      %56 = vector.extract %55[0, 0, 0] : f32 from vector<1x1x1xf32>
      %cst_34 = arith.constant 4.8828125E-4 : f32
      %57 = arith.mulf %56, %cst_34 : f32
      %cst_35 = arith.constant 2.000000e+00 : f32
      %58 = arith.mulf %cst_35, %46 : f32
      %cst_36 = arith.constant 9.99999997E-7 : f32
      %59 = arith.addf %58, %cst_36 : f32
      %cst_37 = arith.constant 9.99999997E-7 : f32
      %60 = arith.addf %51, %cst_37 : f32
      %61 = arith.divf %59, %60 : f32
      %cst_38 = arith.constant 1.000000e+00 : f32
      %62 = arith.subf %cst_38, %61 : f32
      %63 = arith.addf %57, %62 : f32
      %64 = vector.broadcast %63 : f32 to vector<1x1xf32>
      %c0_39 = arith.constant 0 : index
      %c0_40 = arith.constant 0 : index
      %65 = vector.load %arg3[%c0_39, %c0_40] : memref<1x1xf32, #tpu.memory_space<vmem>>, vector<1x1xf32>
      tpu.vector_store %arg3[%c0_39, %c0_40], %64 {strides = array<i32>} : memref<1x1xf32, #tpu.memory_space<vmem>>, vector<1x1xf32>,
    } else {
    }
    return
  }
  func.func @transform_0(%arg0: i32) -> (i32, i32) {
    %c0_i32 = arith.constant 0 : i32
    %c0_i32_0 = arith.constant 0 : i32
    return %arg0, %c0_i32 : i32, i32
  }
  func.func @transform_1(%arg0: i32) -> (i32, i32) {
    %c0_i32 = arith.constant 0 : i32
    %c0_i32_0 = arith.constant 0 : i32
    return %arg0, %c0_i32 : i32, i32
  }
  func.func @transform_2(%arg0: i32) -> (i32, i32) {
    %c0_i32 = arith.constant 0 : i32
    %c0_i32_0 = arith.constant 0 : i32
    %c0_i32_1 = arith.constant 0 : i32
    return %c0_i32, %c0_i32_0 : i32, i32
  }
}

</mosaic_0001>

<bundles_post_ra>
// kernel: tpu_custom_call.1
= control target key start
LH: loop header
LB: loop body
LE: loop exit
PB: predicated region body
PF: predicated region fallthrough
CT: control target
= control target key end

     0   :  { %7 = vsyncpa [#allocation6], 0  ;;  %s295_s0 = inlined_call_operand.hbm [shape: f32[16,128], index: 0, kind: input, shape index: {}]   ;;  %s296_s1 = inlined_call_operand.hbm [shape: f32[16,128], index: 1, kind: input, shape index: {}]   ;;  %s297_s2 = inlined_call_operand.hbm [shape: f32[1,1], index: 2, kind: output, shape index: {}]  }
   0x1   :  { %8 = vsyncpa [#allocation9], 0 }
   0x2   :  { %9 = vsyncpa [#allocation7], 0  ;;  %s266_s9 = smov [#allocation5]  }
   0x3   :  { %s15_s10 = sshll.u32 %s266_s9, 4  ;;  %s16_s10 = int_to_ptr.vmem [resolvable:$true] %s15_s10 }
   0x4   :  { %s208_s11 = scalar_lea.vmem %s16_s10, 256  ;;  %p213_p1 = scmp.lt.s32.totalorder %s16_s10, %s16_s10 }
   0x5   :  { %p209_p0 = scmp.ne.s32.totalorder %s16_s10, %s208_s11  ;;  %p214_p2 = scmp.lt.s32.totalorder %s208_s11, %s208_s11 }
   0x7   :  { %p215_p3 = por %p214_p2, %p213_p1 }
   0x9   :  { %p216_p4 = pnand %p215_p3, %p209_p0 }
   0xb   :  { %219 = shalt.err (!%p216_p4)
}
   0xc   :  { %s267_s12 = smov 128   ;;  %s268_s13 = smov 8  }
   0xd   :  { %21 = dma.hbm_to_vmem [thread:$0]  %s295_s0, 256, %s16_s10, [#allocation6], %s267_s12, %s267_s12, %s268_s13  }
   0xe   :  { %s269_s16 = smov [#allocation8]  }
   0xf   :  { %s27_s17 = sshll.u32 %s269_s16, 4  ;;  %s28_s17 = int_to_ptr.vmem [resolvable:$true] %s27_s17 }
  0x10   :  { %s228_s18 = scalar_lea.vmem %s28_s17, 256  ;;  %p233_p6 = scmp.lt.s32.totalorder %s28_s17, %s28_s17 }
  0x11   :  { %p229_p5 = scmp.ne.s32.totalorder %s28_s17, %s228_s18  ;;  %p234_p7 = scmp.lt.s32.totalorder %s228_s18, %s228_s18 }
  0x13   :  { %p235_p8 = por %p234_p7, %p233_p6 }
  0x15   :  { %p236_p9 = pnand %p235_p8, %p229_p5 }
  0x17   :  { %239 = shalt.err (!%p236_p9)
}
  0x18   :  { %33 = dma.hbm_to_vmem [thread:$0]  %s296_s1, 256, %s28_s17, [#allocation9], %s267_s12, %s267_s12, %s268_s13  }
  0x19   :  { %260 = dma.done.wait [#allocation6], 256  }
  0x1a   :  { %261 = vsyncadd [#allocation6], 4294967040 }
  0x1b   :  { %262 = dma.done.wait [#allocation9], 256  }
  0x1c   :  { %263 = vsyncadd [#allocation9], 4294967040  ;;  %v47_v0 = vld [vmem:[#allocation5] sm:$0xff]  ;;  %v48_v1 = vld [vmem:[#allocation5 + $0x8] sm:$0xff]  ;;  %s270_s27 = smov [#allocation10]   ;;  %vm155_vm4 = vcmask 0  }
  0x1d   :  { %v51_v2 = vand.u32 2147483647, %v47_v0  ;;  %v52_v3 = vand.u32 2147483647, %v48_v1  ;;  %vm85_vm0 = vcmp.ge.f32.partialorder %v47_v0, 0.0  ;;  %v49_v14 = vld [vmem:[#allocation8] sm:$0xff] }
  0x1e   :  { %vm86_vm1 = vcmp.ge.f32.partialorder %v48_v1, 0.0  ;;  %v61_v15 = vmul.f32 %v49_v14, %v47_v0  ;;  %v50_v17 = vld [vmem:[#allocation8 + $0x8] sm:$0xff]  ;;  %v59_v19 = vmax.f32 %v47_v0, 0.0  ;;  %v60_v23 = vmax.f32 %v48_v1, 0.0  ;;  %s163_s28 = sshll.u32 %s270_s27, 4  ;;  %s164_s28 = int_to_ptr.vmem [resolvable:$true] %s163_s28 }
  0x1f   :  { %v53_v4 = vsub.f32 0.0, %v51_v2  ;;  %v54_v5 = vsub.f32 0.0, %v52_v3  ;;  %v62_v24 = vmul.f32 %v50_v17, %v48_v1  ;;  %s240_s4 = scalar_lea.vmem %s164_s28, 16  ;;  %s244_s5 = scalar_lea.vmem %s164_s28, 32 }
  0x20   :  { %v63_v32 = vsub.f32 %v59_v19, %v61_v15  ;;  %p241_p10 = scmp.ne.s32.totalorder %s164_s28, %s240_s4  ;;  %p245_p11 = scmp.lt.s32.totalorder %s164_s28, %s164_s28 }
  0x21   :  { %v55_v6 = vmul.f32 1.442695, %v53_v4  ;;  %v57_v7 = vmul.f32 1.442695, %v54_v5  ;;  %v64_v36 = vsub.f32 %v60_v23, %v62_v24  ;;  %p246_p12 = scmp.lt.s32.totalorder %s244_s5, %s240_s4 }
  0x23   :  { %186 = vpow2.f32 %v55_v6  ;;  %p247_p13 = por %p246_p12, %p245_p11 }
  0x24   :  { %188 = vpow2.f32 %v57_v7 }
  0x25   :  { %p248_p0 = pnand %p247_p13, %p241_p10 }
  0x30   :  { %v187_v8 = vpop.eup %186 }
  0x31   :  { %v189_v9 = vpop.eup %188  ;;  %v65_v10 = vadd.f32 1.0, %v187_v8  ;;  %v68_v12 = vmul.f32 -0.5, %v187_v8  ;;  %v87_v18 = vsel %vm85_vm0, 1.0, %v187_v8  ;;  %v71_v20 = vand.u32 2147483647, %v187_v8 }
  0x32   :  { %v74_v11 = vadd.f32 1.0, %v189_v9  ;;  %v77_v13 = vmul.f32 -0.5, %v189_v9  ;;  %v88_v22 = vsel %vm86_vm1, 1.0, %v189_v9  ;;  %v80_v25 = vand.u32 2147483647, %v189_v9 }
  0x33   :  { %190 = vrcp.f32 %v65_v10  ;;  %v69_v16 = vadd.f32 1.0, %v68_v12  ;;  %vm72_vm2 = vcmp.lt.f32.partialorder %v71_v20, 0.0004427343 }
  0x34   :  { %192 = vrcp.f32 %v74_v11  ;;  %v78_v21 = vadd.f32 1.0, %v77_v13  ;;  %vm81_vm3 = vcmp.lt.f32.partialorder %v80_v25, 0.0004427343 }
  0x35   :  { %194 = vlog2.f32 %v65_v10  ;;  %v70_v29 = vmul.f32 %v187_v8, %v69_v16 }
  0x36   :  { %196 = vlog2.f32 %v74_v11  ;;  %v79_v33 = vmul.f32 %v189_v9, %v78_v21 }
  0x40   :  { %v191_v26 = vpop.eup %190 }
  0x41   :  { %v193_v27 = vpop.eup %192  ;;  %v92_v28 = vmul.f32 %v191_v26, %v87_v18 }
  0x42   :  { %v195_v30 = vpop.eup %194  ;;  %v94_v31 = vmul.f32 %v193_v27, %v88_v22 }
  0x43   :  { %v197_v34 = vpop.eup %196  ;;  %v96_v35 = vmul.f32 %v92_v28, %v49_v14  ;;  %v67_v37 = vmul.f32 0.6931472, %v195_v30  ;;  %v102_v39 = vadd.f32 %v92_v28, %v49_v14 }
  0x44   :  { %v97_v38 = vmul.f32 %v94_v31, %v50_v17  ;;  %v103_v40 = vadd.f32 %v94_v31, %v50_v17  ;;  %v76_v41 = vmul.f32 0.6931472, %v197_v34 }
  0x45   :  { %v73_v42 = vsel %vm72_vm2, %v70_v29, %v67_v37 }
  0x46   :  { %v98_v43 = vadd.f32 %v97_v38, %v96_v35  ;;  %v82_v44 = vsel %vm81_vm3, %v79_v33, %v76_v41  ;;  %v83_v45 = vadd.f32 %v73_v42, %v63_v32  ;;  %v104_v47 = vadd.f32 %v103_v40, %v102_v39 }
  0x47   :  { %v84_v46 = vadd.f32 %v82_v44, %v64_v36 }
  0x48   :  { %115 = vadd.xlane.f32.xlu0 %v98_v43 }
  0x49   :  { %v108_v48 = vadd.f32 %v84_v46, %v83_v45 }
  0x4b   :  { %135 = vadd.xlane.f32.xlu1 %v108_v48 }
  0x4c   :  { %125 = vadd.xlane.f32.xlu0 %v104_v47 }
  0xd1   :  { %v116_v49 = vpop.xlane.xlu0 %115 }
  0xd2   :  { %v117_v50 = vrot.slane %v116_v49, 4 }
  0xd4   :  { %v118_v51 = vadd.f32 %v117_v50, %v116_v49  ;;  %v136_v52 = vpop.xlane.xlu1 %135 }
  0xd5   :  { %v126_v53 = vpop.xlane.xlu0 %125  ;;  %v137_v54 = vrot.slane %v136_v52, 4 }
  0xd6   :  { %v119_v55 = vrot.slane %v118_v51, 2  ;;  %v127_v56 = vrot.slane %v126_v53, 4 }
  0xd7   :  { %v138_v57 = vadd.f32 %v137_v54, %v136_v52 }
  0xd8   :  { %v128_v58 = vadd.f32 %v127_v56, %v126_v53  ;;  %v120_v59 = vadd.f32 %v119_v55, %v118_v51 }
  0xd9   :  { %v139_v60 = vrot.slane %v138_v57, 2 }
  0xda   :  { %v129_v61 = vrot.slane %v128_v58, 2  ;;  %v121_v62 = vrot.slane %v120_v59, 1 }
  0xdb   :  { %v140_v63 = vadd.f32 %v139_v60, %v138_v57 }
  0xdc   :  { %v130_v0 = vadd.f32 %v129_v61, %v128_v58  ;;  %v122_v1 = vadd.f32 %v121_v62, %v120_v59 }
  0xdd   :  { %v141_v2 = vrot.slane %v140_v63, 1 }
  0xde   :  { %173 = vpush %v122_v1  ;;  %v131_v3 = vrot.slane %v130_v0, 1 }
  0xdf   :  { %v142_v4 = vadd.f32 %v141_v2, %v140_v63 }
  0xe0   :  { %v132_v5 = vadd.f32 %v131_v3, %v130_v0 }
  0xe2   :  { %175 = vpush %v132_v5 }
  0xe3   :  { %177 = vpush %v142_v4 }
 0x10f   :  { %s174_s0 = spop %173 }
 0x110   :  { %s145_s22 = smul.f32 2.0, %s174_s0 }
 0x112   :  { %s146_s23 = sadd.f32 1e-06, %s145_s22 }
 0x113   :  { %s176_s1 = spop %175 }
 0x114   :  { %s147_s21 = sadd.f32 1e-06, %s176_s1  ;;  %s178_s24 = spop %177 }
 0x115   :  { %s144_s29 = smul.f32 0.00048828125, %s178_s24 }
 0x116   :  { %v148_v6 = vstv %s147_s21 }
 0x117   :  { %198 = vrcp.f32 %v148_v6 }
 0x124   :  { %v199_v7 = vpop.eup %198 }
 0x125   :  { %179 = vpush %v199_v7 }
 0x156   :  { %s180_s25 = spop %179 }
 0x157   :  { %s151_s26 = smul.f32 %s180_s25, %s146_s23 }
 0x159   :  { %s152_s30 = ssub.f32 1.0, %s151_s26 }
 0x15b   :  { %s153_s3 = sadd.f32 %s152_s30, %s144_s29 }
 0x15d   :  { %v154_v8 = vstv %s153_s3 }
 0x15e   :  { %156 = vst.msk [vmem:[#allocation10] sm:$0x1] %vm155_vm4, %v154_v8 }
 0x15f   :  { %251 = shalt.err (!%p248_p0)
}
 0x160   :  { %166 = dma.vmem_to_hbm [thread:$0]  %s164_s28, 16, %s297_s2, [#allocation7]  }
 0x161   :  { %264 = dma.done.wait [#allocation7], 16  }
 0x162   :  { %265 = vsyncadd [#allocation7], 4294967280 }
 0x163   :  { %170 = vsyncpa [#allocation6], 1 }
 0x164   :  { %171 = vsyncpa [#allocation9], 1 }
 0x165   :  { %172 = vsyncpa [#allocation7], 1 }

</bundles_post_ra>
